<compile_context>
chip_gen: v6e
topology: v6e:2x2x1
jax: 0.10.0
libtpu: 0.0.40
codegen_flags: <defaults>
</compile_context>

<pallas_src>
import functools

import jax
import jax.numpy as jnp
from jax import lax
from jax.experimental import pallas as pl
from jax.experimental.pallas import tpu as pltpu

_MASK_VALUE = -1e30  # finite "-inf" for the block-diagonal softmax mask


def _fused_mha_kernel(x_ref, wq_ref, wk_ref, wv_ref, wo_ref, bias_ref, o_ref,
                      q2_ref, k2_ref, v2_ref, ctx_ref, *,
                      bt, n_head, h_dim, compute_dtype):
    """Whole-batch fused multi-head attention (grid=(1,)).

    x_ref:    (B*T, E) f32 activations (cast to compute_dtype in-kernel)
    w*_ref:   (E, E)   fused per-head projections (transposed; scale in wq)
    wo_ref:   (E, E)   output projection (transposed)
    bias_ref: (R, R)   block-diagonal additive mask, R = n_head*B*T
    o_ref:    (B*T, E) output
    q2/k2/v2_ref: (R, h_dim) head-stacked scratch (compute_dtype)
    ctx_ref:  (B*T, E) context re-assembly scratch (compute_dtype)
    """
    x = x_ref[...].astype(compute_dtype)                              # (BT, E)

    # Q/K/V for all heads & batches: three lane-dense matmuls with N = E.
    # 1/sqrt(d_k) is pre-folded into wq_ref at weight-prep time.
    q = jnp.dot(x, wq_ref[...], preferred_element_type=jnp.float32)   # (BT, E)
    k = jnp.dot(x, wk_ref[...], preferred_element_type=jnp.float32)
    v = jnp.dot(x, wv_ref[...], preferred_element_type=jnp.float32)

    # Stack heads along the sublane axis -> (R, h_dim); each contiguous block
    # of T rows is one independent (head, batch) attention group.
    for h in range(n_head):
        cols = slice(h * h_dim, (h + 1) * h_dim)
        rows = slice(h * bt, (h + 1) * bt)
        q2_ref[rows, :] = q[:, cols].astype(compute_dtype)
        k2_ref[rows, :] = k[:, cols].astype(compute_dtype)
        v2_ref[rows, :] = v[:, cols].astype(compute_dtype)

    q2 = q2_ref[...]
    k2 = k2_ref[...]
    v2 = v2_ref[...]

    # ONE score matmul for all (head, batch) groups + block-diagonal mask.
    s = lax.dot_general(q2, k2, (((1,), (1,)), ((), ())),
                        preferred_element_type=jnp.float32)           # (R, R)
    s = s + bias_ref[...]

    # Numerically stable softmax; max/exp/sum in f32, divide on the EUP.
    s = s - jnp.max(s, axis=-1, keepdims=True)
    p = jnp.exp(s)
    p = p * pl.reciprocal(jnp.sum(p, axis=-1, keepdims=True), approx=True)

    # ONE P @ V matmul for all groups.
    ctx2 = jnp.dot(p.astype(compute_dtype), v2,
                   preferred_element_type=jnp.float32)                 # (R, h_dim)

    # Un-stack heads into lane-contiguous (BT, E) via scratch column writes
    # (no register concatenate).
    for h in range(n_head):
        ctx_ref[:, h * h_dim:(h + 1) * h_dim] = (
            ctx2[h * bt:(h + 1) * bt, :].astype(compute_dtype))

    # Fused output projection; lane-dense (BT, E) store.
    o_ref[...] = jnp.dot(ctx_ref[...], wo_ref[...],
                         preferred_element_type=jnp.float32).astype(o_ref.dtype)


def prepare_mha_weights(wq, wk, wv, wo, *, compute_dtype=jnp.float32):
    """One-time weight prep (call at parameter materialization, NOT per forward).

    wq/wk/wv: (n_head, h_dim, E) -- PyTorch nn.Linear (out, in) weight per head.
    wo:       (E, E)             -- PyTorch nn.Linear (out, in) weight.
    Returns (wq_t, wk_t, wv_t, wo_t), each (E, E), transposed so the kernel
    computes x @ W_t (== x @ W.T). Column order [head0 | head1 | ...] matches
    torch.cat(attention_results, dim=-1); 1/sqrt(d_k) is folded into wq_t.
    """
    n_head, h_dim, e = wq.shape
    scale = float(h_dim) ** -0.5

    def fuse(w):                              # (n_head, h_dim, E) -> (E, E)
        return jnp.transpose(w, (2, 0, 1)).reshape(e, n_head * h_dim)

    wq_t = (fuse(wq) * scale).astype(compute_dtype)
    wk_t = fuse(wk).astype(compute_dtype)
    wv_t = fuse(wv).astype(compute_dtype)
    wo_t = jnp.transpose(wo, (1, 0)).astype(compute_dtype)
    return wq_t, wk_t, wv_t, wo_t


@functools.partial(jax.jit, static_argnames=("n_head", "compute_dtype"))
def multi_head_attention(x, wq_t, wk_t, wv_t, wo_t, *, n_head,
                         compute_dtype=jnp.float32):
    """x: (B, T, E) f32; weights from prepare_mha_weights. Returns (B, T, E) f32."""
    b, t, e = x.shape
    h_dim = e // n_head
    bt = b * t
    r = n_head * bt

    # Free bitcast: one lane-dense (B*T, E) block for QKV / output projections.
    x2 = x.reshape(bt, e)

    # Block-diagonal additive mask over the (head, batch) groups. Depends only
    # on static shapes -> constant-folded by XLA at compile time.
    gid = jnp.arange(r, dtype=jnp.int32) // t
    bias = jnp.where(gid[:, None] == gid[None, :], 0.0,
                     _MASK_VALUE).astype(jnp.float32)

    kernel = functools.partial(
        _fused_mha_kernel, bt=bt, n_head=n_head, h_dim=h_dim,
        compute_dtype=compute_dtype)

    out2 = pl.pallas_call(
        kernel,
        out_shape=jax.ShapeDtypeStruct((bt, e), jnp.float32),
        grid_spec=pltpu.PrefetchScalarGridSpec(
            num_scalar_prefetch=0,
            grid=(1,),                                   # whole batch, one step
            in_specs=[
                pl.BlockSpec((bt, e), lambda i: (0, 0)),   # x (f32)
                pl.BlockSpec((e, e), lambda i: (0, 0)),    # wq_t
                pl.BlockSpec((e, e), lambda i: (0, 0)),    # wk_t
                pl.BlockSpec((e, e), lambda i: (0, 0)),    # wv_t
                pl.BlockSpec((e, e), lambda i: (0, 0)),    # wo_t
                pl.BlockSpec((r, r), lambda i: (0, 0)),    # block-diag mask
            ],
            out_specs=pl.BlockSpec((bt, e), lambda i: (0, 0)),
            scratch_shapes=[
                pltpu.VMEM((r, h_dim), compute_dtype),     # q2 (head-stacked)
                pltpu.VMEM((r, h_dim), compute_dtype),     # k2
                pltpu.VMEM((r, h_dim), compute_dtype),     # v2
                pltpu.VMEM((bt, e), compute_dtype),        # ctx re-assembly
            ]),
        compiler_params=pltpu.CompilerParams(
            dimension_semantics=("arbitrary",),
            vmem_limit_bytes=64 * 1024 * 1024),            # headroom for bigger blocks
    )(x2, wq_t, wk_t, wv_t, wo_t, bias)

    return out2.reshape(b, t, e)


def _reference(x, wq, wk, wv, wo):
    """Pure-JAX (f32) replica of the PyTorch forward for verification."""
    n_head, h_dim, _ = wq.shape
    outs = []
    for h in range(n_head):
        q = x @ wq[h].T
        k = x @ wk[h].T
        v = x @ wv[h].T
        s = (q @ jnp.swapaxes(k, 1, 2)) / jnp.sqrt(jnp.float32(h_dim))
        p = jax.nn.softmax(s, axis=-1)
        outs.append(p @ v)
    return jnp.concatenate(outs, axis=-1) @ wo.T


if __name__ == "__main__":
    # Module-consistent small shapes: E = 32, n_head = 4 (E % n_head == 0),
    # batch B = 2, sequence length T = 8.
    B, T, E, n_head = 2, 8, 32, 4
    h_dim = E // n_head

    key = jax.random.PRNGKey(0)
    kx, kq, kk, kv, ko = jax.random.split(key, 5)

    x = jax.random.normal(kx, (B, T, E), dtype=jnp.float32)
    bound = 1.0 / (E ** 0.5)
    # nn.Linear(E, h_dim, bias=False) weight is (h_dim, E); one per head.
    wq = jax.random.uniform(kq, (n_head, h_dim, E), jnp.float32, -bound, bound)
    wk = jax.random.uniform(kk, (n_head, h_dim, E), jnp.float32, -bound, bound)
    wv = jax.random.uniform(kv, (n_head, h_dim, E), jnp.float32, -bound, bound)
    # nn.Linear(E, E, bias=False) weight is (E, E).
    wo = jax.random.uniform(ko, (E, E), jnp.float32, -bound, bound)

    ref = _reference(x, wq, wk, wv, wo)

    # f32 MXU path (only the EUP approx reciprocal differs from exact softmax).
    params_f32 = prepare_mha_weights(wq, wk, wv, wo, compute_dtype=jnp.float32)
    out_f32 = jax.block_until_ready(
        multi_head_attention(x, *params_f32, n_head=n_head,
                             compute_dtype=jnp.float32))
    assert out_f32.shape == (B, T, E)
    assert jnp.allclose(out_f32, ref, atol=1e-2, rtol=1e-2), "f32 mismatch"

    # bf16 MXU path (softmax stays f32; x cast in-kernel).
    params_bf16 = prepare_mha_weights(wq, wk, wv, wo, compute_dtype=jnp.bfloat16)
    out_bf16 = jax.block_until_ready(
        multi_head_attention(x, *params_bf16, n_head=n_head,
                             compute_dtype=jnp.bfloat16))
    assert out_bf16.shape == (B, T, E)
    assert jnp.allclose(out_bf16, ref, atol=5e-2, rtol=5e-2), "bf16 mismatch"

    print("KERNEL_OK")
</pallas_src>

<mosaic_0001>
module attributes {stable_mosaic.version = 11 : i64} {
  func.func @_fused_mha_kernel(%arg0: i32, %arg1: memref<16x32xf32, #tpu.memory_space<vmem>>, %arg2: memref<32x32xf32, #tpu.memory_space<vmem>>, %arg3: memref<32x32xf32, #tpu.memory_space<vmem>>, %arg4: memref<32x32xf32, #tpu.memory_space<vmem>>, %arg5: memref<32x32xf32, #tpu.memory_space<vmem>>, %arg6: memref<64x64xf32, #tpu.memory_space<vmem>>, %arg7: memref<16x32xf32, #tpu.memory_space<vmem>>, %arg8: memref<64x8xf32, #tpu.memory_space<vmem>>, %arg9: memref<64x8xf32, #tpu.memory_space<vmem>>, %arg10: memref<64x8xf32, #tpu.memory_space<vmem>>, %arg11: memref<16x32xf32, #tpu.memory_space<vmem>>) attributes {dimension_semantics = [#tpu.dimension_semantics<arbitrary>], iteration_bounds = array<i64: 1>, scalar_prefetch = 0 : i64, scratch_operands = 4 : i64, tpu.core_type = #tpu.core_type<tc>, window_params = [{pipeline_mode = #tpu.pipeline_mode<synchronous>, transform_indices = @transform_0, window_bounds = array<i64: 16, 32>}, {pipeline_mode = #tpu.pipeline_mode<synchronous>, transform_indices = @transform_1, window_bounds = array<i64: 32, 32>}, {pipeline_mode = #tpu.pipeline_mode<synchronous>, transform_indices = @transform_2, window_bounds = array<i64: 32, 32>}, {pipeline_mode = #tpu.pipeline_mode<synchronous>, transform_indices = @transform_3, window_bounds = array<i64: 32, 32>}, {pipeline_mode = #tpu.pipeline_mode<synchronous>, transform_indices = @transform_4, window_bounds = array<i64: 32, 32>}, {pipeline_mode = #tpu.pipeline_mode<synchronous>, transform_indices = @transform_5, window_bounds = array<i64: 64, 64>}, {pipeline_mode = #tpu.pipeline_mode<synchronous>, transform_indices = @transform_6, window_bounds = array<i64: 16, 32>}]} {
    %c0 = arith.constant 0 : index
    %c0_0 = arith.constant 0 : index
    %0 = vector.load %arg1[%c0, %c0_0] : memref<16x32xf32, #tpu.memory_space<vmem>>, vector<16x32xf32>
    %c0_1 = arith.constant 0 : index
    %c0_2 = arith.constant 0 : index
    %1 = vector.load %arg2[%c0_1, %c0_2] : memref<32x32xf32, #tpu.memory_space<vmem>>, vector<32x32xf32>
    %cst = arith.constant dense<0.000000e+00> : vector<16x32xf32>
    %2 = tpu.matmul %0, %1, %cst {dimension_numbers = #tpu.dot_dimension_numbers<[1], [0], [0], [1], [0, 0, 1, 1], [], []>} : vector<16x32xf32>, vector<32x32xf32>, vector<16x32xf32> -> vector<16x32xf32>
    %c0_3 = arith.constant 0 : index
    %c0_4 = arith.constant 0 : index
    %3 = vector.load %arg3[%c0_3, %c0_4] : memref<32x32xf32, #tpu.memory_space<vmem>>, vector<32x32xf32>
    %cst_5 = arith.constant dense<0.000000e+00> : vector<16x32xf32>
    %4 = tpu.matmul %0, %3, %cst_5 {dimension_numbers = #tpu.dot_dimension_numbers<[1], [0], [0], [1], [0, 0, 1, 1], [], []>} : vector<16x32xf32>, vector<32x32xf32>, vector<16x32xf32> -> vector<16x32xf32>
    %c0_6 = arith.constant 0 : index
    %c0_7 = arith.constant 0 : index
    %5 = vector.load %arg4[%c0_6, %c0_7] : memref<32x32xf32, #tpu.memory_space<vmem>>, vector<32x32xf32>
    %cst_8 = arith.constant dense<0.000000e+00> : vector<16x32xf32>
    %6 = tpu.matmul %0, %5, %cst_8 {dimension_numbers = #tpu.dot_dimension_numbers<[1], [0], [0], [1], [0, 0, 1, 1], [], []>} : vector<16x32xf32>, vector<32x32xf32>, vector<16x32xf32> -> vector<16x32xf32>
    %7 = vector.extract_strided_slice %2 {offsets = [0, 0], sizes = [16, 8], strides = [1, 1]} : vector<16x32xf32> to vector<16x8xf32>
    %c0_9 = arith.constant 0 : index
    %c0_10 = arith.constant 0 : index
    %8 = vector.load %arg8[%c0_9, %c0_10] : memref<64x8xf32, #tpu.memory_space<vmem>>, vector<16x8xf32>
    tpu.vector_store %arg8[%c0_9, %c0_10], %7 {strides = array<i32>} : memref<64x8xf32, #tpu.memory_space<vmem>>, vector<16x8xf32>,
    %9 = vector.extract_strided_slice %4 {offsets = [0, 0], sizes = [16, 8], strides = [1, 1]} : vector<16x32xf32> to vector<16x8xf32>
    %c0_11 = arith.constant 0 : index
    %c0_12 = arith.constant 0 : index
    %10 = vector.load %arg9[%c0_11, %c0_12] : memref<64x8xf32, #tpu.memory_space<vmem>>, vector<16x8xf32>
    tpu.vector_store %arg9[%c0_11, %c0_12], %9 {strides = array<i32>} : memref<64x8xf32, #tpu.memory_space<vmem>>, vector<16x8xf32>,
    %11 = vector.extract_strided_slice %6 {offsets = [0, 0], sizes = [16, 8], strides = [1, 1]} : vector<16x32xf32> to vector<16x8xf32>
    %c0_13 = arith.constant 0 : index
    %c0_14 = arith.constant 0 : index
    %12 = vector.load %arg10[%c0_13, %c0_14] : memref<64x8xf32, #tpu.memory_space<vmem>>, vector<16x8xf32>
    tpu.vector_store %arg10[%c0_13, %c0_14], %11 {strides = array<i32>} : memref<64x8xf32, #tpu.memory_space<vmem>>, vector<16x8xf32>,
    %13 = vector.extract_strided_slice %2 {offsets = [0, 8], sizes = [16, 8], strides = [1, 1]} : vector<16x32xf32> to vector<16x8xf32>
    %c16 = arith.constant 16 : index
    %c0_15 = arith.constant 0 : index
    %14 = vector.load %arg8[%c16, %c0_15] : memref<64x8xf32, #tpu.memory_space<vmem>>, vector<16x8xf32>
    tpu.vector_store %arg8[%c16, %c0_15], %13 {strides = array<i32>} : memref<64x8xf32, #tpu.memory_space<vmem>>, vector<16x8xf32>,
    %15 = vector.extract_strided_slice %4 {offsets = [0, 8], sizes = [16, 8], strides = [1, 1]} : vector<16x32xf32> to vector<16x8xf32>
    %c16_16 = arith.constant 16 : index
    %c0_17 = arith.constant 0 : index
    %16 = vector.load %arg9[%c16_16, %c0_17] : memref<64x8xf32, #tpu.memory_space<vmem>>, vector<16x8xf32>
    tpu.vector_store %arg9[%c16_16, %c0_17], %15 {strides = array<i32>} : memref<64x8xf32, #tpu.memory_space<vmem>>, vector<16x8xf32>,
    %17 = vector.extract_strided_slice %6 {offsets = [0, 8], sizes = [16, 8], strides = [1, 1]} : vector<16x32xf32> to vector<16x8xf32>
    %c16_18 = arith.constant 16 : index
    %c0_19 = arith.constant 0 : index
    %18 = vector.load %arg10[%c16_18, %c0_19] : memref<64x8xf32, #tpu.memory_space<vmem>>, vector<16x8xf32>
    tpu.vector_store %arg10[%c16_18, %c0_19], %17 {strides = array<i32>} : memref<64x8xf32, #tpu.memory_space<vmem>>, vector<16x8xf32>,
    %19 = vector.extract_strided_slice %2 {offsets = [0, 16], sizes = [16, 8], strides = [1, 1]} : vector<16x32xf32> to vector<16x8xf32>
    %c32 = arith.constant 32 : index
    %c0_20 = arith.constant 0 : index
    %20 = vector.load %arg8[%c32, %c0_20] : memref<64x8xf32, #tpu.memory_space<vmem>>, vector<16x8xf32>
    tpu.vector_store %arg8[%c32, %c0_20], %19 {strides = array<i32>} : memref<64x8xf32, #tpu.memory_space<vmem>>, vector<16x8xf32>,
    %21 = vector.extract_strided_slice %4 {offsets = [0, 16], sizes = [16, 8], strides = [1, 1]} : vector<16x32xf32> to vector<16x8xf32>
    %c32_21 = arith.constant 32 : index
    %c0_22 = arith.constant 0 : index
    %22 = vector.load %arg9[%c32_21, %c0_22] : memref<64x8xf32, #tpu.memory_space<vmem>>, vector<16x8xf32>
    tpu.vector_store %arg9[%c32_21, %c0_22], %21 {strides = array<i32>} : memref<64x8xf32, #tpu.memory_space<vmem>>, vector<16x8xf32>,
    %23 = vector.extract_strided_slice %6 {offsets = [0, 16], sizes = [16, 8], strides = [1, 1]} : vector<16x32xf32> to vector<16x8xf32>
    %c32_23 = arith.constant 32 : index
    %c0_24 = arith.constant 0 : index
    %24 = vector.load %arg10[%c32_23, %c0_24] : memref<64x8xf32, #tpu.memory_space<vmem>>, vector<16x8xf32>
    tpu.vector_store %arg10[%c32_23, %c0_24], %23 {strides = array<i32>} : memref<64x8xf32, #tpu.memory_space<vmem>>, vector<16x8xf32>,
    %25 = vector.extract_strided_slice %2 {offsets = [0, 24], sizes = [16, 8], strides = [1, 1]} : vector<16x32xf32> to vector<16x8xf32>
    %c48 = arith.constant 48 : index
    %c0_25 = arith.constant 0 : index
    %26 = vector.load %arg8[%c48, %c0_25] : memref<64x8xf32, #tpu.memory_space<vmem>>, vector<16x8xf32>
    tpu.vector_store %arg8[%c48, %c0_25], %25 {strides = array<i32>} : memref<64x8xf32, #tpu.memory_space<vmem>>, vector<16x8xf32>,
    %27 = vector.extract_strided_slice %4 {offsets = [0, 24], sizes = [16, 8], strides = [1, 1]} : vector<16x32xf32> to vector<16x8xf32>
    %c48_26 = arith.constant 48 : index
    %c0_27 = arith.constant 0 : index
    %28 = vector.load %arg9[%c48_26, %c0_27] : memref<64x8xf32, #tpu.memory_space<vmem>>, vector<16x8xf32>
    tpu.vector_store %arg9[%c48_26, %c0_27], %27 {strides = array<i32>} : memref<64x8xf32, #tpu.memory_space<vmem>>, vector<16x8xf32>,
    %29 = vector.extract_strided_slice %6 {offsets = [0, 24], sizes = [16, 8], strides = [1, 1]} : vector<16x32xf32> to vector<16x8xf32>
    %c48_28 = arith.constant 48 : index
    %c0_29 = arith.constant 0 : index
    %30 = vector.load %arg10[%c48_28, %c0_29] : memref<64x8xf32, #tpu.memory_space<vmem>>, vector<16x8xf32>
    tpu.vector_store %arg10[%c48_28, %c0_29], %29 {strides = array<i32>} : memref<64x8xf32, #tpu.memory_space<vmem>>, vector<16x8xf32>,
    %c0_30 = arith.constant 0 : index
    %c0_31 = arith.constant 0 : index
    %31 = vector.load %arg8[%c0_30, %c0_31] : memref<64x8xf32, #tpu.memory_space<vmem>>, vector<64x8xf32>
    %c0_32 = arith.constant 0 : index
    %c0_33 = arith.constant 0 : index
    %32 = vector.load %arg9[%c0_32, %c0_33] : memref<64x8xf32, #tpu.memory_space<vmem>>, vector<64x8xf32>
    %c0_34 = arith.constant 0 : index
    %c0_35 = arith.constant 0 : index
    %33 = vector.load %arg10[%c0_34, %c0_35] : memref<64x8xf32, #tpu.memory_space<vmem>>, vector<64x8xf32>
    %cst_36 = arith.constant dense<0.000000e+00> : vector<64x64xf32>
    %34 = tpu.matmul %31, %32, %cst_36 {dimension_numbers = #tpu.dot_dimension_numbers<[1], [1], [0], [0], [0, 0, 1, 0], [], []>} : vector<64x8xf32>, vector<64x8xf32>, vector<64x64xf32> -> vector<64x64xf32>
    %c0_37 = arith.constant 0 : index
    %c0_38 = arith.constant 0 : index
    %35 = vector.load %arg6[%c0_37, %c0_38] : memref<64x64xf32, #tpu.memory_space<vmem>>, vector<64x64xf32>
    %36 = arith.addf %34, %35 : vector<64x64xf32>
    %cst_39 = arith.constant dense<0xFF800000> : vector<64xf32>
    %37 = vector.multi_reduction <maximumf>, %36, %cst_39 [1] : vector<64x64xf32> to vector<64xf32>
    %38 = vector.shape_cast %37 : vector<64xf32> to vector<64x1xf32>
    %39 = vector.broadcast %38 : vector<64x1xf32> to vector<64x64xf32>
    %40 = arith.subf %36, %39 : vector<64x64xf32>
    %41 = math.exp %40 : vector<64x64xf32>
    %cst_40 = arith.constant dense<0.000000e+00> : vector<64xf32>
    %42 = vector.multi_reduction <add>, %41, %cst_40 [1] : vector<64x64xf32> to vector<64xf32>
    %43 = vector.shape_cast %42 : vector<64xf32> to vector<64x1xf32>
    %44 = tpu.reciprocal %43 {approx = true} : vector<64x1xf32> -> vector<64x1xf32>
    %45 = vector.broadcast %44 : vector<64x1xf32> to vector<64x64xf32>
    %46 = arith.mulf %41, %45 : vector<64x64xf32>
    %cst_41 = arith.constant dense<0.000000e+00> : vector<64x8xf32>
    %47 = tpu.matmul %46, %33, %cst_41 {dimension_numbers = #tpu.dot_dimension_numbers<[1], [0], [0], [1], [0, 0, 1, 1], [], []>} : vector<64x64xf32>, vector<64x8xf32>, vector<64x8xf32> -> vector<64x8xf32>
    %48 = vector.extract_strided_slice %47 {offsets = [0, 0], sizes = [16, 8], strides = [1, 1]} : vector<64x8xf32> to vector<16x8xf32>
    %c0_42 = arith.constant 0 : index
    %c0_43 = arith.constant 0 : index
    %49 = vector.load %arg11[%c0_42, %c0_43] : memref<16x32xf32, #tpu.memory_space<vmem>>, vector<16x8xf32>
    tpu.vector_store %arg11[%c0_42, %c0_43], %48 {strides = array<i32>} : memref<16x32xf32, #tpu.memory_space<vmem>>, vector<16x8xf32>,
    %50 = vector.extract_strided_slice %47 {offsets = [16, 0], sizes = [16, 8], strides = [1, 1]} : vector<64x8xf32> to vector<16x8xf32>
    %c0_44 = arith.constant 0 : index
    %c8 = arith.constant 8 : index
    %51 = vector.load %arg11[%c0_44, %c8] : memref<16x32xf32, #tpu.memory_space<vmem>>, vector<16x8xf32>
    tpu.vector_store %arg11[%c0_44, %c8], %50 {strides = array<i32>} : memref<16x32xf32, #tpu.memory_space<vmem>>, vector<16x8xf32>,
    %52 = vector.extract_strided_slice %47 {offsets = [32, 0], sizes = [16, 8], strides = [1, 1]} : vector<64x8xf32> to vector<16x8xf32>
    %c0_45 = arith.constant 0 : index
    %c16_46 = arith.constant 16 : index
    %53 = vector.load %arg11[%c0_45, %c16_46] : memref<16x32xf32, #tpu.memory_space<vmem>>, vector<16x8xf32>
    tpu.vector_store %arg11[%c0_45, %c16_46], %52 {strides = array<i32>} : memref<16x32xf32, #tpu.memory_space<vmem>>, vector<16x8xf32>,
    %54 = vector.extract_strided_slice %47 {offsets = [48, 0], sizes = [16, 8], strides = [1, 1]} : vector<64x8xf32> to vector<16x8xf32>
    %c0_47 = arith.constant 0 : index
    %c24 = arith.constant 24 : index
    %55 = vector.load %arg11[%c0_47, %c24] : memref<16x32xf32, #tpu.memory_space<vmem>>, vector<16x8xf32>
    tpu.vector_store %arg11[%c0_47, %c24], %54 {strides = array<i32>} : memref<16x32xf32, #tpu.memory_space<vmem>>, vector<16x8xf32>,
    %c0_48 = arith.constant 0 : index
    %c0_49 = arith.constant 0 : index
    %56 = vector.load %arg11[%c0_48, %c0_49] : memref<16x32xf32, #tpu.memory_space<vmem>>, vector<16x32xf32>
    %c0_50 = arith.constant 0 : index
    %c0_51 = arith.constant 0 : index
    %57 = vector.load %arg5[%c0_50, %c0_51] : memref<32x32xf32, #tpu.memory_space<vmem>>, vector<32x32xf32>
    %cst_52 = arith.constant dense<0.000000e+00> : vector<16x32xf32>
    %58 = tpu.matmul %56, %57, %cst_52 {dimension_numbers = #tpu.dot_dimension_numbers<[1], [0], [0], [1], [0, 0, 1, 1], [], []>} : vector<16x32xf32>, vector<32x32xf32>, vector<16x32xf32> -> vector<16x32xf32>
    %c0_53 = arith.constant 0 : index
    %c0_54 = arith.constant 0 : index
    %59 = vector.load %arg7[%c0_53, %c0_54] : memref<16x32xf32, #tpu.memory_space<vmem>>, vector<16x32xf32>
    tpu.vector_store %arg7[%c0_53, %c0_54], %58 {strides = array<i32>} : memref<16x32xf32, #tpu.memory_space<vmem>>, vector<16x32xf32>,
    return
  }
  func.func @transform_0(%arg0: i32) -> (i32, i32) {
    %c0_i32 = arith.constant 0 : i32
    %c0_i32_0 = arith.constant 0 : i32
    %c0_i32_1 = arith.constant 0 : i32
    return %c0_i32, %c0_i32_0 : i32, i32
  }
  func.func @transform_1(%arg0: i32) -> (i32, i32) {
    %c0_i32 = arith.constant 0 : i32
    %c0_i32_0 = arith.constant 0 : i32
    %c0_i32_1 = arith.constant 0 : i32
    return %c0_i32, %c0_i32_0 : i32, i32
  }
  func.func @transform_2(%arg0: i32) -> (i32, i32) {
    %c0_i32 = arith.constant 0 : i32
    %c0_i32_0 = arith.constant 0 : i32
    %c0_i32_1 = arith.constant 0 : i32
    return %c0_i32, %c0_i32_0 : i32, i32
  }
  func.func @transform_3(%arg0: i32) -> (i32, i32) {
    %c0_i32 = arith.constant 0 : i32
    %c0_i32_0 = arith.constant 0 : i32
    %c0_i32_1 = arith.constant 0 : i32
    return %c0_i32, %c0_i32_0 : i32, i32
  }
  func.func @transform_4(%arg0: i32) -> (i32, i32) {
    %c0_i32 = arith.constant 0 : i32
    %c0_i32_0 = arith.constant 0 : i32
    %c0_i32_1 = arith.constant 0 : i32
    return %c0_i32, %c0_i32_0 : i32, i32
  }
  func.func @transform_5(%arg0: i32) -> (i32, i32) {
    %c0_i32 = arith.constant 0 : i32
    %c0_i32_0 = arith.constant 0 : i32
    %c0_i32_1 = arith.constant 0 : i32
    return %c0_i32, %c0_i32_0 : i32, i32
  }
  func.func @transform_6(%arg0: i32) -> (i32, i32) {
    %c0_i32 = arith.constant 0 : i32
    %c0_i32_0 = arith.constant 0 : i32
    %c0_i32_1 = arith.constant 0 : i32
    return %c0_i32, %c0_i32_0 : i32, i32
  }
}

</mosaic_0001>

<bundles_post_ra>
// kernel: multi_head_attention.1
= control target key start
LH: loop header
LB: loop body
LE: loop exit
PB: predicated region body
PF: predicated region fallthrough
CT: control target
= control target key end

     0   :  { %11 = vsyncpa [#allocation7], 0  ;;  %s1524_s0 = inlined_call_operand.hbm [shape: f32[16,32], index: 0, kind: input, shape index: {}]   ;;  %s1525_s1 = inlined_call_operand.vmem [shape: f32[32,32], index: 1, kind: input, shape index: {}]   ;;  %s1526_s2 = inlined_call_operand.vmem [shape: f32[32,32], index: 2, kind: input, shape index: {}]   ;;  %s1527_s3 = inlined_call_operand.hbm [shape: f32[32,32], index: 3, kind: input, shape index: {}]   ;;  %s1528_s4 = inlined_call_operand.hbm [shape: f32[32,32], index: 4, kind: input, shape index: {}]   ;;  %s1529_s5 = inlined_call_operand.vmem [shape: f32[64,64], index: 5, kind: input, shape index: {}]   ;;  %s1530_s6 = inlined_call_operand.hbm [shape: f32[16,32], index: 6, kind: output, shape index: {}]  }
   0x1   :  { %12 = vsyncpa [#allocation10], 0 }
   0x2   :  { %13 = vsyncpa [#allocation8], 0  ;;  %s1258_s21 = smov [#allocation9]   ;;  %s1259_s23 = smov [#allocation6]  }
   0x3   :  { %s35_s22 = sshll.u32 %s1258_s21, 4  ;;  %s19_s24 = sshll.u32 %s1259_s23, 4  ;;  %s36_s22 = int_to_ptr.vmem [resolvable:$true] %s35_s22  ;;  %s20_s24 = int_to_ptr.vmem [resolvable:$true] %s19_s24 }
   0x4   :  { %s1180_s25 = scalar_lea.vmem %s36_s22, 512  ;;  %p1185_p1 = scmp.lt.s32.totalorder %s36_s22, %s36_s22 }
   0x5   :  { %p1181_p0 = scmp.ne.s32.totalorder %s36_s22, %s1180_s25  ;;  %p1186_p2 = scmp.lt.s32.totalorder %s1180_s25, %s1180_s25 }
   0x7   :  { %p1187_p3 = por %p1186_p2, %p1185_p1 }
   0x9   :  { %p1188_p4 = pnand %p1187_p3, %p1181_p0 }
   0xb   :  { %1191 = shalt.err (!%p1188_p4)
}
   0xc   :  { %s1260_s26 = smov 128   ;;  %s1261_s27 = smov 8  }
   0xd   :  { %41 = dma.hbm_to_vmem [thread:$0]  %s1527_s3, 512, %s36_s22, [#allocation10], %s1260_s26, %s1260_s26, %s1261_s27  }
   0xe   :  { %s1200_s30 = scalar_lea.vmem %s20_s24, 256  ;;  %p1205_p6 = scmp.lt.s32.totalorder %s20_s24, %s20_s24 }
   0xf   :  { %p1201_p5 = scmp.ne.s32.totalorder %s20_s24, %s1200_s30  ;;  %p1206_p7 = scmp.lt.s32.totalorder %s1200_s30, %s1200_s30 }
  0x11   :  { %p1207_p8 = por %p1206_p7, %p1205_p6 }
  0x13   :  { %p1208_p9 = pnand %p1207_p8, %p1201_p5 }
  0x15   :  { %1211 = shalt.err (!%p1208_p9)
}
  0x16   :  { %25 = dma.hbm_to_vmem [thread:$0]  %s1524_s0, 256, %s20_s24, [#allocation7], %s1260_s26, %s1260_s26, %s1261_s27  }
  0x17   :  { %s1262_s9 = smov [#allocation11]  }
  0x18   :  { %s47_s10 = sshll.u32 %s1262_s9, 4  ;;  %s48_s10 = int_to_ptr.vmem [resolvable:$true] %s47_s10 }
  0x19   :  { %s1220_s11 = scalar_lea.vmem %s48_s10, 512  ;;  %p1225_p11 = scmp.lt.s32.totalorder %s48_s10, %s48_s10 }
  0x1a   :  { %p1221_p10 = scmp.ne.s32.totalorder %s48_s10, %s1220_s11  ;;  %p1226_p12 = scmp.lt.s32.totalorder %s1220_s11, %s1220_s11 }
  0x1c   :  { %p1227_p13 = por %p1226_p12, %p1225_p11 }
  0x1e   :  { %p1228_p0 = pnand %p1227_p13, %p1221_p10 }
  0x20   :  { %1231 = shalt.err (!%p1228_p0)
}
  0x21   :  { %53 = dma.hbm_to_vmem [thread:$0]  %s1528_s4, 512, %s48_s10, [#allocation10], %s1260_s26, %s1260_s26, %s1261_s27  }
  0x22   :  { %1252 = dma.done.wait [#allocation7], 256  }
  0x23   :  { %1253 = vsyncadd [#allocation7], 4294967040 }
  0x24   :  { %1254 = dma.done.wait [#allocation10], 1024  }
  0x25   :  { %1255 = vsyncadd [#allocation10], 4294966272  ;;  %vm71_vm0 = vcmask 261120   ;;  %v156_v0 = vld [vmem:[%s1526_s2 + $0x18] sm:$0xff]  ;;  %v155_v1 = vld [vmem:[%s1526_s2 + $0x10] sm:$0xff]  ;;  %vm311_vm1 = vcmask 64512  }
  0x26   :  { %1040 = vmatprep.subr.mxu1 %v156_v0  ;;  %v65_v2 = vld [vmem:[#allocation6] sm:$0xff]  ;;  %v154_v3 = vld [vmem:[%s1526_s2 + $0x8] sm:$0xff]  ;;  %v70_v4 = vld [vmem:[%s1525_s1 + $0x18] sm:$0xff]  ;;  %s1265_s29 = smov 120   ;;  %vm581_vm2 = vcmask 523264   ;;  %s1267_s19 = smov 24  }
  0x27   :  { %1041 = vmatpush3.msra.mxu1 %v156_v0  ;;  %1048 = vmatprep.mubr.msk.f32.mxu1 %vm71_vm0, %v65_v2  ;;  %v69_v5 = vld [vmem:[%s1525_s1 + $0x10] sm:$0xff]  ;;  %v153_v6 = vld [vmem:[%s1526_s2] sm:$0xff]  ;;  %v68_v7 = vld [vmem:[%s1525_s1 + $0x8] sm:$0xff]  ;;  %s1263_s2 = smov 112   ;;  %vm809_vm3 = vcmask 130112   ;;  %vm820_vm4 = vcmask 195712  }
  0x28   :  { %1042 = vmatprep.subr.mxu1 %v155_v1  ;;  %1029 = vmatprep.subr.mxu0 %v70_v4  ;;  %v66_v8 = vld [vmem:[#allocation6 + $0x8] sm:$0xff]  ;;  %v67_v9 = vld [vmem:[%s1525_s1] sm:$0xff]  ;;  %s1264_s1 = smov 104   ;;  %v234_v16 = vld [vmem:[#allocation9 + $0x10] sm:$0xff]  ;;  %vm831_vm5 = vcmask 261312   ;;  %s1268_s20 = smov [#allocation12]  }
  0x29   :  { %1043 = vmatpush3.msra.mxu1 %v155_v1  ;;  %1030 = vmatpush3.msra.mxu0 %v70_v4  ;;  %v235_v15 = vld [vmem:[#allocation9 + $0x18] sm:$0xff]  ;;  %v233_v17 = vld [vmem:[#allocation9 + $0x8] sm:$0xff]  ;;  %v232_v18 = vld [vmem:[#allocation9] sm:$0xff]  ;;  %s928_s21 = sshll.u32 %s1268_s20, 4  ;;  %s929_s21 = int_to_ptr.vmem [resolvable:$true] %s928_s21 }
  0x2a   :  { %1044 = vmatprep.subr.mxu1 %v154_v3  ;;  %1031 = vmatprep.subr.mxu0 %v69_v5  ;;  %v421_v48 = vld [vmem:[%s1529_s5 + $0x8] sm:$0xff]  ;;  %v420_v50 = vld [vmem:[%s1529_s5] sm:$0xff]  ;;  %v423_v53 = vld [vmem:[%s1529_s5 + $0x18] sm:$0xff]  ;;  %s1232_s22 = scalar_lea.vmem %s929_s21, 256  ;;  %p1237_p2 = scmp.lt.s32.totalorder %s929_s21, %s929_s21 }
  0x2b   :  { %1045 = vmatpush3.msra.mxu1 %v154_v3  ;;  %1032 = vmatpush3.msra.mxu0 %v69_v5  ;;  %v422_v60 = vld [vmem:[%s1529_s5 + $0x10] sm:$0xff]  ;;  %v424_v62 = vld [vmem:[%s1529_s5 + $0x20] sm:$0xff]  ;;  %v425_v1 = vld [vmem:[%s1529_s5 + $0x28] sm:$0xff]  ;;  %p1233_p1 = scmp.ne.s32.totalorder %s929_s21, %s1232_s22  ;;  %p1238_p3 = scmp.lt.s32.totalorder %s1232_s22, %s1232_s22 }
  0x2c   :  { %1046 = vmatprep.subr.mxu1 %v153_v6  ;;  %1033 = vmatprep.subr.mxu0 %v68_v7 }
  0x2d   :  { %1047 = vmatpush3.msra.mxu1 %v153_v6  ;;  %1034 = vmatpush3.msra.mxu0 %v68_v7  ;;  %v427_v7 = vld [vmem:[%s1529_s5 + $0x38] sm:$0xff]  ;;  %p1239_p4 = por %p1238_p3, %p1237_p2 }
  0x2e   :  { %1049 = vmatmul.mubr.msk.f32.vlgmr.msra.gmra.mxu1 %vm71_vm0, %v66_v8  ;;  %1035 = vmatprep.subr.mxu0 %v67_v9 }
  0x2f   :  { %1036 = vmatpush3.msra.mxu0 %v67_v9  ;;  %1037 = vmatprep.mubr.msk.f32.mxu0 %vm71_vm0, %v65_v2  ;;  %p1240_p5 = pnand %p1239_p4, %p1233_p1 }
  0x30   :  { %1038 = vmatmul.mubr.msk.f32.vlgmr.msra.gmra.mxu0 %vm71_vm0, %v66_v8  ;;  %1051 = vmatprep.subr.mxu0 %v235_v15 }
  0x31   :  { %1059 = vmatprep.mubr.msk.f32.mxu0 %vm71_vm0, %v65_v2  ;;  %1052 = vmatpush3.msra.mxu0 %v235_v15 }
  0x32   :  { %1053 = vmatprep.subr.mxu0 %v234_v16 }
  0x33   :  { %1054 = vmatpush3.msra.mxu0 %v234_v16 }
  0x34   :  { %1055 = vmatprep.subr.mxu0 %v233_v17 }
  0x35   :  { %1056 = vmatpush3.msra.mxu0 %v233_v17 }
  0x36   :  { %1057 = vmatprep.subr.mxu0 %v232_v18 }
  0x37   :  { %1058 = vmatpush3.msra.mxu0 %v232_v18 }
  0x38   :  { %1060 = vmatmul.mubr.msk.f32.vlgmr.msra.gmra.mxu0 %vm71_vm0, %v66_v8 }
  0xee   :  { %v1050_v10 = vpop.f32.mrf.mxu1 }
  0xef   :  { %315 = vst.msk [vmem:[#allocation3 + $0x8] sm:$0xff] %vm311_vm1, %v1050_v10  ;;  %358 = vrot.lane.b32.xlu1 %v1050_v10, %s1263_s2  ;;  %382 = vrot.lane.b32.xlu0 %v1050_v10, %s1264_s1 }
  0xf0   :  { %v223_v11 = vpop.f32.mrf.mxu1  ;;  %v1039_v12 = vpop.f32.mrf.mxu0 }
  0xf1   :  { %314 = vst.msk [vmem:[#allocation3] sm:$0xff] %vm311_vm1, %v223_v11  ;;  %313 = vst.msk [vmem:[#allocation2 + $0x8] sm:$0xff] %vm311_vm1, %v1039_v12 }
  0xf2   :  { %v144_v13 = vpop.f32.mrf.mxu0 }
  0xf3   :  { %356 = vrot.lane.b32.xlu1 %v223_v11, %s1263_s2  ;;  %380 = vrot.lane.b32.xlu0 %v223_v11, %s1264_s1  ;;  %312 = vst.msk [vmem:[#allocation2] sm:$0xff] %vm311_vm1, %v144_v13 }
  0xf6   :  { %v405_v37 = vld [vmem:[#allocation3 + $0x8] sm:$0xff] }
  0xf7   :  { %330 = vrot.lane.b32.xlu1 %v223_v11, %s1265_s29  ;;  %332 = vrot.lane.b32.xlu0 %v1050_v10, %s1265_s29 }
  0xf8   :  { %v404_v38 = vld [vmem:[#allocation3] sm:$0xff]  ;;  %v397_v40 = vld [vmem:[#allocation2 + $0x8] sm:$0xff]  ;;  %v1404_v46 = vpop.f32.mrf.mxu0 }
  0xf9   :  { %317 = vst.msk [vmem:[#allocation4 + $0x8] sm:$0xff] %vm311_vm1, %v1404_v46 }
  0xfa   :  { %v396_v14 = vld [vmem:[#allocation2] sm:$0xff]  ;;  %v1408_v47 = vpop.f32.mrf.mxu0 }
  0xfb   :  { %322 = vrot.lane.b32.xlu1 %v1039_v12, %s1265_s29  ;;  %320 = vrot.lane.b32.xlu0 %v144_v13, %s1265_s29  ;;  %316 = vst.msk [vmem:[#allocation4] sm:$0xff] %vm311_vm1, %v1408_v47 }
  0xfc   :  { %1078 = vmatprep.mubr.msk.f32.mxu1 %vm311_vm1, %v396_v14 }
  0xff   :  { %350 = vrot.lane.b32.xlu1 %v1039_v12, %s1263_s2  ;;  %348 = vrot.lane.b32.xlu0 %v144_v13, %s1263_s2 }
 0x103   :  { %374 = vrot.lane.b32.xlu1 %v1039_v12, %s1264_s1  ;;  %372 = vrot.lane.b32.xlu0 %v144_v13, %s1264_s1  ;;  %v426_v13 = vld [vmem:[%s1529_s5 + $0x30] sm:$0xff]  ;;  %s1266_s5 = smov 16  }
 0x161   :  { %v359_v19 = vpop.permute.xlu1 %358  ;;  %v383_v20 = vpop.permute.xlu0 %382 }
 0x162   :  { %363 = vst.msk [vmem:[#allocation3 + $0x28] sm:$0xff] %vm311_vm1, %v359_v19  ;;  %387 = vst.msk [vmem:[#allocation3 + $0x38] sm:$0xff] %vm311_vm1, %v383_v20 }
 0x165   :  { %v357_v21 = vpop.permute.xlu1 %356  ;;  %v381_v22 = vpop.permute.xlu0 %380 }
 0x166   :  { %362 = vst.msk [vmem:[#allocation3 + $0x20] sm:$0xff] %vm311_vm1, %v357_v21  ;;  %386 = vst.msk [vmem:[#allocation3 + $0x30] sm:$0xff] %vm311_vm1, %v381_v22 }
 0x169   :  { %v331_v23 = vpop.permute.xlu1 %330  ;;  %v333_v24 = vpop.permute.xlu0 %332  ;;  %v411_v25 = vld [vmem:[#allocation3 + $0x38] sm:$0xff]  ;;  %v409_v29 = vld [vmem:[#allocation3 + $0x28] sm:$0xff] }
 0x16a   :  { %336 = vst.msk [vmem:[#allocation3 + $0x10] sm:$0xff] %vm311_vm1, %v331_v23  ;;  %337 = vst.msk [vmem:[#allocation3 + $0x18] sm:$0xff] %vm311_vm1, %v333_v24  ;;  %1062 = vmatprep.subr.msk.mxu1 %vm311_vm1, %v411_v25 }
 0x16b   :  { %1063 = vmatpush3.xpose.msk.msra.mxu1 %vm311_vm1, %v411_v25 }
 0x16d   :  { %v410_v26 = vld [vmem:[#allocation3 + $0x30] sm:$0xff]  ;;  %v323_v27 = vpop.permute.xlu1 %322  ;;  %v321_v28 = vpop.permute.xlu0 %320  ;;  %v408_v32 = vld [vmem:[#allocation3 + $0x20] sm:$0xff] }
 0x16e   :  { %1064 = vmatprep.subr.msk.mxu1 %vm311_vm1, %v410_v26  ;;  %327 = vst.msk [vmem:[#allocation2 + $0x18] sm:$0xff] %vm311_vm1, %v323_v27  ;;  %326 = vst.msk [vmem:[#allocation2 + $0x10] sm:$0xff] %vm311_vm1, %v321_v28 }
 0x16f   :  { %1065 = vmatpush3.xpose.msk.msra.mxu1 %vm311_vm1, %v410_v26 }
 0x170   :  { %1066 = vmatprep.subr.msk.mxu1 %vm311_vm1, %v409_v29 }
 0x171   :  { %v351_v30 = vpop.permute.xlu1 %350  ;;  %v349_v31 = vpop.permute.xlu0 %348  ;;  %v407_v35 = vld [vmem:[#allocation3 + $0x18] sm:$0xff]  ;;  %v406_v36 = vld [vmem:[#allocation3 + $0x10] sm:$0xff] }
 0x172   :  { %355 = vst.msk [vmem:[#allocation2 + $0x28] sm:$0xff] %vm311_vm1, %v351_v30  ;;  %354 = vst.msk [vmem:[#allocation2 + $0x20] sm:$0xff] %vm311_vm1, %v349_v31 }
 0x173   :  { %1067 = vmatpush3.xpose.msk.msra.mxu1 %vm311_vm1, %v409_v29 }
 0x174   :  { %1068 = vmatprep.subr.msk.mxu1 %vm311_vm1, %v408_v32 }
 0x175   :  { %v375_v33 = vpop.permute.xlu1 %374  ;;  %v373_v34 = vpop.permute.xlu0 %372  ;;  %v398_v39 = vld [vmem:[#allocation2 + $0x10] sm:$0xff]  ;;  %v399_v41 = vld [vmem:[#allocation2 + $0x18] sm:$0xff] }
 0x176   :  { %379 = vst.msk [vmem:[#allocation2 + $0x38] sm:$0xff] %vm311_vm1, %v375_v33  ;;  %378 = vst.msk [vmem:[#allocation2 + $0x30] sm:$0xff] %vm311_vm1, %v373_v34 }
 0x177   :  { %1069 = vmatpush3.xpose.msk.msra.mxu1 %vm311_vm1, %v408_v32 }
 0x178   :  { %1070 = vmatprep.subr.msk.mxu1 %vm311_vm1, %v407_v35 }
 0x179   :  { %v400_v42 = vld [vmem:[#allocation2 + $0x20] sm:$0xff]  ;;  %v401_v43 = vld [vmem:[#allocation2 + $0x28] sm:$0xff] }
 0x17b   :  { %1071 = vmatpush3.xpose.msk.msra.mxu1 %vm311_vm1, %v407_v35 }
 0x17c   :  { %1072 = vmatprep.subr.msk.mxu1 %vm311_vm1, %v406_v36 }
 0x17d   :  { %v402_v44 = vld [vmem:[#allocation2 + $0x30] sm:$0xff]  ;;  %v403_v45 = vld [vmem:[#allocation2 + $0x38] sm:$0xff] }
 0x17f   :  { %1073 = vmatpush3.xpose.msk.msra.mxu1 %vm311_vm1, %v406_v36 }
 0x180   :  { %1074 = vmatprep.subr.msk.mxu1 %vm311_vm1, %v405_v37 }
 0x183   :  { %1075 = vmatpush3.xpose.msk.msra.mxu1 %vm311_vm1, %v405_v37 }
 0x184   :  { %1076 = vmatprep.subr.msk.mxu1 %vm311_vm1, %v404_v38 }
 0x187   :  { %1077 = vmatpush3.xpose.msk.msra.mxu1 %vm311_vm1, %v404_v38 }
 0x18a   :  { %1079 = vmatmul.mubr.msk.f32.vlgmr.msra.gmra.mxu1 %vm311_vm1, %v397_v40 }
 0x18b   :  { %1081 = vmatprep.mubr.msk.f32.mxu1 %vm311_vm1, %v398_v39 }
 0x18e   :  { %1082 = vmatmul.mubr.msk.f32.gmra.mxu1 %vm311_vm1, %v399_v41 }
 0x18f   :  { %1084 = vmatprep.mubr.msk.f32.mxu1 %vm311_vm1, %v400_v42 }
 0x192   :  { %1085 = vmatmul.mubr.msk.f32.gmra.mxu1 %vm311_vm1, %v401_v43 }
 0x193   :  { %1087 = vmatprep.mubr.msk.f32.mxu1 %vm311_vm1, %v402_v44 }
 0x196   :  { %1088 = vmatmul.mubr.msk.f32.gmra.mxu1 %vm311_vm1, %v403_v45 }
 0x24a   :  { %v1080_v49 = vpop.f32.mrf.mxu1 }
 0x24b   :  { %v548_v51 = vadd.f32 %v1080_v49, %v421_v48 }
 0x24c   :  { %v542_v52 = vpop.f32.mrf.mxu1 }
 0x24d   :  { %v543_v54 = vadd.f32 %v542_v52, %v420_v50  ;;  %v585_v55 = vsel %vm581_vm2, %v548_v51, -inf }
 0x24e   :  { %586 = vmax.xlane.f32.xlu1 %v585_v55  ;;  %v1083_v56 = vpop.f32.mrf.mxu1 }
 0x24f   :  { %v558_v57 = vadd.f32 %v1083_v56, %v423_v53  ;;  %v582_v58 = vsel %vm581_vm2, %v543_v54, -inf }
 0x250   :  { %v552_v59 = vpop.f32.mrf.mxu1  ;;  %583 = vmax.xlane.f32.xlu0 %v582_v58 }
 0x251   :  { %v553_v63 = vadd.f32 %v552_v59, %v422_v60  ;;  %v591_v0 = vsel %vm581_vm2, %v558_v57, -inf }
 0x252   :  { %v1086_v61 = vpop.f32.mrf.mxu1 }
 0x253   :  { %v568_v4 = vadd.f32 %v1086_v61, %v425_v1  ;;  %v588_v6 = vsel %vm581_vm2, %v553_v63, -inf }
 0x254   :  { %v562_v2 = vpop.f32.mrf.mxu1  ;;  %592 = vmax.xlane.f32.xlu0 %v591_v0 }
 0x255   :  { %v563_v3 = vadd.f32 %v562_v2, %v424_v62  ;;  %v597_v10 = vsel %vm581_vm2, %v568_v4, -inf }
 0x256   :  { %v1089_v8 = vpop.f32.mrf.mxu1 }
 0x257   :  { %v594_v5 = vsel %vm581_vm2, %v563_v3, -inf  ;;  %v1438_v9 = vadd.f32 %v1089_v8, %v427_v7 }
 0x258   :  { %595 = vmax.xlane.f32.xlu1 %v594_v5  ;;  %589 = vmax.xlane.f32.xlu0 %v588_v6  ;;  %v572_v12 = vpop.f32.mrf.mxu1 }
 0x259   :  { %v603_v11 = vsel %vm581_vm2, %v1438_v9, -inf  ;;  %v1452_v14 = vadd.f32 %v572_v12, %v426_v13 }
 0x25b   :  { %v600_v15 = vsel %vm581_vm2, %v1452_v14, -inf }
 0x25c   :  { %598 = vmax.xlane.f32.xlu0 %v597_v10 }
 0x260   :  { %604 = vmax.xlane.f32.xlu0 %v603_v11 }
 0x269   :  { %388 = vrot.lane.b32.xlu1 %v1408_v47, %s1264_s1 }
 0x26d   :  { %366 = vrot.lane.b32.xlu1 %v1404_v46, %s1263_s2 }
 0x276   :  { %390 = vrot.lane.b32.xlu0 %v1404_v46, %s1264_s1 }
 0x291   :  { %601 = vmax.xlane.f32.xlu1 %v600_v15  ;;  %v413_v15 = vld [vmem:[#allocation4 + $0x8] sm:$0xff] }
 0x2d7   :  { %v587_v16 = vpop.xlane.xlu1 %586 }
 0x2d8   :  { %v607_v17 = vsub.f32 %v548_v51, %v587_v16 }
 0x2d9   :  { %v584_v18 = vpop.xlane.xlu0 %583 }
 0x2da   :  { %v616_v19 = vmul.f32 1.442695, %v607_v17  ;;  %v606_v20 = vsub.f32 %v543_v54, %v584_v18  ;;  %v412_v17 = vld [vmem:[#allocation4] sm:$0xff] }
 0x2dc   :  { %1140 = vpow2.f32 %v616_v19  ;;  %v614_v21 = vmul.f32 1.442695, %v606_v20 }
 0x2dd   :  { %v593_v22 = vpop.xlane.xlu0 %592 }
 0x2de   :  { %1142 = vpow2.f32 %v614_v21  ;;  %v609_v23 = vsub.f32 %v558_v57, %v593_v22 }
 0x2e0   :  { %v620_v24 = vmul.f32 1.442695, %v609_v23 }
 0x2e1   :  { %v596_v25 = vpop.xlane.xlu1 %595  ;;  %v590_v26 = vpop.xlane.xlu0 %589 }
 0x2e2   :  { %1144 = vpow2.f32 %v620_v24  ;;  %v610_v27 = vsub.f32 %v563_v3, %v596_v25  ;;  %v608_v28 = vsub.f32 %v553_v63, %v590_v26 }
 0x2e4   :  { %v622_v29 = vmul.f32 1.442695, %v610_v27  ;;  %v618_v30 = vmul.f32 1.442695, %v608_v28 }
 0x2e5   :  { %v599_v31 = vpop.xlane.xlu0 %598  ;;  %v389_v32 = vpop.permute.xlu1 %388 }
 0x2e6   :  { %1146 = vpow2.f32 %v622_v29  ;;  %v611_v33 = vsub.f32 %v568_v4, %v599_v31  ;;  %394 = vst.msk [vmem:[#allocation4 + $0x30] sm:$0xff] %vm311_vm1, %v389_v32  ;;  %v839_v31 = vld [vmem:[#allocation11 + $0x18] sm:$0xff] }
 0x2e7   :  { %1148 = vpow2.f32 %v618_v30 }
 0x2e8   :  { %v624_v34 = vmul.f32 1.442695, %v611_v33 }
 0x2e9   :  { %v1457_v35 = vpop.eup %1140  ;;  %v605_v36 = vpop.xlane.xlu0 %604 }
 0x2ea   :  { %v367_v37 = vpop.permute.xlu1 %366  ;;  %1150 = vpow2.f32 %v624_v34  ;;  %v633_v38 = vsel %vm581_vm2, %v1457_v35, 0.0  ;;  %v613_v55 = vsub.f32 %v1438_v9, %v605_v36  ;;  %v838_v34 = vld [vmem:[#allocation11 + $0x10] sm:$0xff] }
 0x2eb   :  { %371 = vst.msk [vmem:[#allocation4 + $0x28] sm:$0xff] %vm311_vm1, %v367_v37  ;;  %v1143_v39 = vpop.eup %1142  ;;  %634 = vadd.xlane.f32.xlu0 %v633_v38  ;;  %v837_v37 = vld [vmem:[#allocation11 + $0x8] sm:$0xff]  ;;  %v836_v38 = vld [vmem:[#allocation11] sm:$0xff] }
 0x2ec   :  { %v630_v40 = vsel %vm581_vm2, %v1143_v39, 0.0  ;;  %v628_v56 = vmul.f32 1.442695, %v613_v55 }
 0x2ed   :  { %v391_v41 = vpop.permute.xlu0 %390  ;;  %631 = vadd.xlane.f32.xlu1 %v630_v40  ;;  %v418_v52 = vld [vmem:[#allocation4 + $0x30] sm:$0xff] }
 0x2ee   :  { %395 = vst.msk [vmem:[#allocation4 + $0x38] sm:$0xff] %vm311_vm1, %v391_v41  ;;  %1152 = vpow2.f32 %v628_v56 }
 0x2ef   :  { %v1464_v42 = vpop.eup %1144 }
 0x2f0   :  { %v639_v43 = vsel %vm581_vm2, %v1464_v42, 0.0 }
 0x2f1   :  { %640 = vadd.xlane.f32.xlu1 %v639_v43 }
 0x2f2   :  { %v417_v54 = vld [vmem:[#allocation4 + $0x28] sm:$0xff] }
 0x2f3   :  { %v1468_v44 = vpop.eup %1146 }
 0x2f4   :  { %v1470_v45 = vpop.eup %1148  ;;  %v642_v48 = vsel %vm581_vm2, %v1468_v44, 0.0 }
 0x2f5   :  { %643 = vadd.xlane.f32.xlu0 %v642_v48  ;;  %v636_v49 = vsel %vm581_vm2, %v1470_v45, 0.0  ;;  %v419_v50 = vld [vmem:[#allocation4 + $0x38] sm:$0xff] }
 0x2f6   :  { %637 = vadd.xlane.f32.xlu1 %v636_v49  ;;  %1090 = vmatprep.subr.mxu0 %v419_v50 }
 0x2f7   :  { %v1476_v51 = vpop.eup %1150  ;;  %1091 = vmatpush3.msra.mxu0 %v419_v50 }
 0x2f8   :  { %1092 = vmatprep.subr.mxu0 %v418_v52  ;;  %v645_v53 = vsel %vm581_vm2, %v1476_v51, 0.0 }
 0x2f9   :  { %1093 = vmatpush3.msra.mxu0 %v418_v52 }
 0x2fa   :  { %646 = vadd.xlane.f32.xlu1 %v645_v53  ;;  %1094 = vmatprep.subr.mxu0 %v417_v54 }
 0x2fb   :  { %1095 = vmatpush3.msra.mxu0 %v417_v54  ;;  %v1486_v60 = vpop.eup %1152 }
 0x2fc   :  { %v651_v61 = vsel %vm581_vm2, %v1486_v60, 0.0 }
 0x30b   :  { %342 = vrot.lane.b32.xlu1 %v1404_v46, %s1265_s29  ;;  %364 = vrot.lane.b32.xlu0 %v1408_v47, %s1263_s2 }
 0x31a   :  { %v602_v57 = vpop.xlane.xlu1 %601 }
 0x31b   :  { %v612_v58 = vsub.f32 %v1452_v14, %v602_v57 }
 0x31d   :  { %v626_v59 = vmul.f32 1.442695, %v612_v58 }
 0x31f   :  { %1154 = vpow2.f32 %v626_v59 }
 0x32a   :  { %652 = vadd.xlane.f32.xlu0 %v651_v61 }
 0x32c   :  { %v1155_v62 = vpop.eup %1154 }
 0x32d   :  { %v648_v46 = vsel %vm581_vm2, %v1155_v62, 0.0 }
 0x32f   :  { %649 = vadd.xlane.f32.xlu1 %v648_v46 }
 0x340   :  { %340 = vrot.lane.b32.xlu1 %v1408_v47, %s1265_s29 }
 0x374   :  { %v635_v0 = vpop.xlane.xlu0 %634 }
 0x376   :  { %v632_v63 = vpop.xlane.xlu1 %631 }
 0x377   :  { %1156 = vrcp.f32 %v632_v63 }
 0x378   :  { %1158 = vrcp.f32 %v635_v0 }
 0x37a   :  { %v641_v1 = vpop.xlane.xlu1 %640 }
 0x37e   :  { %v644_v2 = vpop.xlane.xlu0 %643 }
 0x37f   :  { %v638_v3 = vpop.xlane.xlu1 %637 }
 0x380   :  { %1160 = vrcp.f32 %v638_v3 }
 0x381   :  { %1162 = vrcp.f32 %v641_v1 }
 0x382   :  { %v365_v4 = vpop.permute.xlu0 %364  ;;  %1164 = vrcp.f32 %v644_v2 }
 0x383   :  { %370 = vst.msk [vmem:[#allocation4 + $0x20] sm:$0xff] %vm311_vm1, %v365_v4  ;;  %v647_v5 = vpop.xlane.xlu1 %646 }
 0x384   :  { %v1157_v6 = vpop.eup %1156  ;;  %1166 = vrcp.f32 %v647_v5 }
 0x385   :  { %v662_v7 = vmul.f32 %v1157_v6, %v1143_v39  ;;  %v1159_v14 = vpop.eup %1158 }
 0x386   :  { %v663_v18 = vmul.f32 %v1159_v14, %v1457_v35 }
 0x387   :  { %v343_v8 = vpop.permute.xlu1 %342  ;;  %1106 = vmatprep.mubr.msk.f32.mxu0 %vm581_vm2, %v662_v7 }
 0x388   :  { %347 = vst.msk [vmem:[#allocation4 + $0x18] sm:$0xff] %vm311_vm1, %v343_v8 }
 0x38a   :  { %v416_v9 = vld [vmem:[#allocation4 + $0x20] sm:$0xff] }
 0x38b   :  { %1096 = vmatprep.subr.mxu0 %v416_v9 }
 0x38c   :  { %1097 = vmatpush3.msra.mxu0 %v416_v9 }
 0x38d   :  { %v1161_v16 = vpop.eup %1160 }
 0x38e   :  { %v1163_v19 = vpop.eup %1162  ;;  %v664_v20 = vmul.f32 %v1161_v16, %v1470_v45 }
 0x38f   :  { %v415_v47 = vld [vmem:[#allocation4 + $0x18] sm:$0xff]  ;;  %v1165_v21 = vpop.eup %1164  ;;  %v665_v22 = vmul.f32 %v1163_v19, %v1464_v42 }
 0x390   :  { %1098 = vmatprep.subr.mxu0 %v415_v47  ;;  %v666_v24 = vmul.f32 %v1165_v21, %v1468_v44 }
 0x391   :  { %1099 = vmatpush3.msra.mxu0 %v415_v47  ;;  %v1167_v23 = vpop.eup %1166 }
 0x392   :  { %v667_v26 = vmul.f32 %v1167_v23, %v1476_v51 }
 0x3b3   :  { %v653_v12 = vpop.xlane.xlu0 %652 }
 0x3b8   :  { %v650_v10 = vpop.xlane.xlu1 %649 }
 0x3b9   :  { %1168 = vrcp.f32 %v650_v10 }
 0x3ba   :  { %1170 = vrcp.f32 %v653_v12 }
 0x3bc   :  { %v341_v11 = vpop.permute.xlu1 %340 }
 0x3bd   :  { %346 = vst.msk [vmem:[#allocation4 + $0x10] sm:$0xff] %vm311_vm1, %v341_v11 }
 0x3c4   :  { %v414_v13 = vld [vmem:[#allocation4 + $0x10] sm:$0xff] }
 0x3c5   :  { %1100 = vmatprep.subr.mxu0 %v414_v13 }
 0x3c6   :  { %1101 = vmatpush3.msra.mxu0 %v414_v13  ;;  %v1169_v25 = vpop.eup %1168 }
 0x3c7   :  { %1102 = vmatprep.subr.mxu0 %v413_v15  ;;  %v1171_v27 = vpop.eup %1170  ;;  %v668_v28 = vmul.f32 %v1169_v25, %v1155_v62 }
 0x3c8   :  { %1103 = vmatpush3.msra.mxu0 %v413_v15  ;;  %v669_v29 = vmul.f32 %v1171_v27, %v1486_v60 }
 0x3c9   :  { %1104 = vmatprep.subr.mxu0 %v412_v17 }
 0x3ca   :  { %1105 = vmatpush3.msra.mxu0 %v412_v17 }
 0x3cb   :  { %1107 = vmatmul.mubr.msk.f32.vlgmr.msra.gmra.mxu0 %vm581_vm2, %v663_v18  ;;  %1118 = vmatprep.subr.mxu0 %v839_v31 }
 0x3cc   :  { %1109 = vmatprep.mubr.msk.f32.mxu0 %vm581_vm2, %v664_v20  ;;  %1119 = vmatpush3.msra.mxu0 %v839_v31 }
 0x3cd   :  { %1120 = vmatprep.subr.mxu0 %v838_v34 }
 0x3ce   :  { %1121 = vmatpush3.msra.mxu0 %v838_v34 }
 0x3cf   :  { %1110 = vmatmul.mubr.msk.f32.gmra.mxu0 %vm581_vm2, %v665_v22  ;;  %1122 = vmatprep.subr.mxu0 %v837_v37 }
 0x3d0   :  { %1112 = vmatprep.mubr.msk.f32.mxu0 %vm581_vm2, %v666_v24  ;;  %1123 = vmatpush3.msra.mxu0 %v837_v37 }
 0x3d1   :  { %1124 = vmatprep.subr.mxu0 %v836_v38 }
 0x3d2   :  { %1125 = vmatpush3.msra.mxu0 %v836_v38 }
 0x3d3   :  { %1113 = vmatmul.mubr.msk.f32.gmra.mxu0 %vm581_vm2, %v667_v26 }
 0x3d4   :  { %1115 = vmatprep.mubr.msk.f32.mxu0 %vm581_vm2, %v668_v28 }
 0x3d7   :  { %1116 = vmatmul.mubr.msk.f32.gmra.mxu0 %vm581_vm2, %v669_v29 }
 0x48b   :  { %v1108_v30 = vpop.f32.mrf.mxu0 }
 0x48c   :  { %800 = vst.msk [vmem:[#allocation5 + $0x8] sm:$0xff] %vm311_vm1, %v1108_v30 }
 0x48d   :  { %v760_v32 = vpop.f32.mrf.mxu0 }
 0x48e   :  { %799 = vst.msk [vmem:[#allocation5] sm:$0xff] %vm311_vm1, %v760_v32 }
 0x48f   :  { %v1111_v33 = vpop.f32.mrf.mxu0 }
 0x490   :  { %805 = vrot.lane.b32.xlu1 %v1111_v33, %s1261_s27 }
 0x491   :  { %v770_v35 = vpop.f32.mrf.mxu0 }
 0x493   :  { %v1114_v36 = vpop.f32.mrf.mxu0 }
 0x494   :  { %803 = vrot.lane.b32.xlu1 %v770_v35, %s1261_s27 }
 0x495   :  { %v780_v39 = vpop.f32.mrf.mxu0 }
 0x497   :  { %v1117_v40 = vpop.f32.mrf.mxu0 }
 0x498   :  { %816 = vrot.lane.b32.xlu1 %v1114_v36, %s1266_s5  ;;  %827 = vrot.lane.b32.xlu0 %v1117_v40, %s1267_s19 }
 0x499   :  { %v790_v41 = vpop.f32.mrf.mxu0 }
 0x49c   :  { %814 = vrot.lane.b32.xlu1 %v780_v39, %s1266_s5 }
 0x4a0   :  { %825 = vrot.lane.b32.xlu1 %v790_v41, %s1267_s19 }
 0x502   :  { %v806_v42 = vpop.permute.xlu1 %805 }
 0x503   :  { %811 = vst.msk [vmem:[#allocation5 + $0x8] sm:$0xff] %vm809_vm3, %v806_v42 }
 0x506   :  { %v804_v43 = vpop.permute.xlu1 %803 }
 0x507   :  { %810 = vst.msk [vmem:[#allocation5] sm:$0xff] %vm809_vm3, %v804_v43 }
 0x50a   :  { %v817_v44 = vpop.permute.xlu1 %816  ;;  %v828_v45 = vpop.permute.xlu0 %827 }
 0x50b   :  { %822 = vst.msk [vmem:[#allocation5 + $0x8] sm:$0xff] %vm820_vm4, %v817_v44 }
 0x50c   :  { %833 = vst.msk [vmem:[#allocation5 + $0x8] sm:$0xff] %vm831_vm5, %v828_v45 }
 0x50e   :  { %v815_v48 = vpop.permute.xlu1 %814 }
 0x50f   :  { %821 = vst.msk [vmem:[#allocation5] sm:$0xff] %vm820_vm4, %v815_v48 }
 0x512   :  { %v826_v49 = vpop.permute.xlu1 %825 }
 0x513   :  { %832 = vst.msk [vmem:[#allocation5] sm:$0xff] %vm831_vm5, %v826_v49  ;;  %v835_v51 = vld [vmem:[#allocation5 + $0x8] sm:$0xff] }
 0x51a   :  { %v834_v50 = vld [vmem:[#allocation5] sm:$0xff] }
 0x51b   :  { %1126 = vmatprep.mubr.msk.f32.mxu0 %vm71_vm0, %v834_v50 }
 0x51c   :  { %1127 = vmatmul.mubr.msk.f32.vlgmr.msra.gmra.mxu0 %vm71_vm0, %v835_v51 }
 0x5dc   :  { %v1128_v52 = vpop.f32.mrf.mxu0 }
 0x5dd   :  { %922 = vst.msk [vmem:[#allocation12 + $0x8] sm:$0xff] %vm71_vm0, %v1128_v52 }
 0x5de   :  { %v912_v53 = vpop.f32.mrf.mxu0 }
 0x5df   :  { %921 = vst.msk [vmem:[#allocation12] sm:$0xff] %vm71_vm0, %v912_v53 }
 0x5e0   :  { %1243 = shalt.err (!%p1240_p5)
}
 0x5e1   :  { %934 = dma.vmem_to_hbm [thread:$0]  %s929_s21, 256, %s1530_s6, [#allocation8], %s1260_s26, %s1260_s26, %s1261_s27  }
 0x5e2   :  { %1256 = dma.done.wait [#allocation8], 256  }
 0x5e3   :  { %1257 = vsyncadd [#allocation8], 4294967040 }
 0x5e4   :  { %938 = vsyncpa [#allocation7], 1 }
 0x5e5   :  { %939 = vsyncpa [#allocation10], 1 }
 0x5e6   :  { %940 = vsyncpa [#allocation8], 1 }

</bundles_post_ra>
